<compile_context>
chip_gen: v6e
topology: v6e:2x2x1
jax: 0.10.0
libtpu: 0.0.40
codegen_flags: <defaults>
</compile_context>

<pallas_src>
import math
import functools

import jax
import jax.numpy as jnp
from jax import lax
from jax.experimental import pallas as pl
from jax.experimental.pallas import tpu as pltpu


def _mha_kernel(x_ref, w_ref, b_ref, wo_ref, bo_ref,
                out_ref, att_ref,
                *, bs, seq, heads, d_k):
    # x_ref:  (3, bs*seq, D)   stacked [q, k, v], batch folded into rows
    # w_ref:  (3, D, D)        pre-transposed (in, out); Wq pre-scaled by 1/sqrt(d_k)
    # b_ref:  (3, 1, D)        biases; bq pre-scaled
    # wo_ref: (D, D)           pre-transposed output projection
    # bo_ref: (1, D)
    # out_ref: (bs*seq, D)
    # att_ref: (bs, heads, seq, seq)

    # Fused-M projections: one (bs*seq, D) @ (D, D) matmul per q/k/v.
    projs = []
    for i in range(3):
        p = jnp.dot(x_ref[i], w_ref[i], preferred_element_type=jnp.float32) + b_ref[i]
        projs.append(p)
    qp, kp, vp = projs                      # each (bs*seq, D); qp already scaled

    wo_t = wo_ref[...]                      # (D, D), (in, out)
    bo = bo_ref[...]                        # (1, D)

    out_rows = []
    for b in range(bs):                     # static unroll over (small) batch
        r0 = b * seq                        # sublane-aligned row offsets (seq = 8)
        qb = qp[r0:r0 + seq, :]
        kb = kp[r0:r0 + seq, :]
        vb = vp[r0:r0 + seq, :]

        head_ps = []
        acc = None
        for h in range(heads):              # static unroll over heads
            lo = h * d_k
            qh = qb[:, lo:lo + d_k]
            kh = kb[:, lo:lo + d_k]
            vh = vb[:, lo:lo + d_k]

            # scores = (qh @ kh.T) -- scale already folded into Wq/bq.
            s = lax.dot_general(qh, kh, (((1,), (1,)), ((), ())),
                                preferred_element_type=jnp.float32)
            m = jnp.max(s, axis=-1, keepdims=True)
            e = jnp.exp(s - m)
            p = e / jnp.sum(e, axis=-1, keepdims=True)          # (seq, seq)
            head_ps.append(p)

            hv = jnp.dot(p, vh, preferred_element_type=jnp.float32)   # (seq, d_k)
            # accumulate into the output projection: sublane-aligned Wo slice
            contrib = jnp.dot(hv, wo_t[lo:lo + d_k, :],
                              preferred_element_type=jnp.float32)     # (seq, D)
            acc = contrib if acc is None else acc + contrib

        out_rows.append(acc + bo)
        # one stacked store per batch instead of per-head 8-wide stores
        att_ref[b] = jnp.stack(head_ps, axis=0).astype(att_ref.dtype)

    out_ref[...] = jnp.concatenate(out_rows, axis=0).astype(out_ref.dtype)


def multi_head_attention(q, k, v, params, *, heads):
    """q, k, v: (bs, S, D) float32.  params: dict of nn.Linear weights/biases."""
    bs, S, D = q.shape
    d_k = D // heads
    inv_sqrt_dk = 1.0 / math.sqrt(d_k)

    # Wrapper-side (one-time) layout work: pre-transpose to (in, out), fold the
    # score scale into Wq/bq, pack operands.
    wq_t = params["wq"].T * inv_sqrt_dk
    bq = params["bq"] * inv_sqrt_dk
    wk_t = params["wk"].T
    wv_t = params["wv"].T
    wo_t = params["wo"].T

    w_stack = jnp.stack([wq_t, wk_t, wv_t], axis=0)                     # (3, D, D)
    b_stack = jnp.stack([bq, params["bk"], params["bv"]], axis=0)       # (3, 1, D)
    x_stack = jnp.stack([q.reshape(bs * S, D),
                         k.reshape(bs * S, D),
                         v.reshape(bs * S, D)], axis=0)                 # (3, bs*S, D)

    kernel = functools.partial(_mha_kernel, bs=bs, seq=S, heads=heads, d_k=d_k)

    full = lambda *shape: pl.BlockSpec(shape, lambda i: (0,) * len(shape))

    out2d, att = pl.pallas_call(
        kernel,
        out_shape=(
            jax.ShapeDtypeStruct((bs * S, D), q.dtype),
            jax.ShapeDtypeStruct((bs, heads, S, S), jnp.float32),
        ),
        grid_spec=pltpu.PrefetchScalarGridSpec(
            num_scalar_prefetch=0,
            grid=(1,),                      # single step: batch folded into M
            in_specs=[
                full(3, bs * S, D),         # stacked q/k/v
                full(3, D, D),              # stacked Wq/Wk/Wv (pre-transposed)
                full(3, 1, D),              # stacked biases
                full(D, D),                 # Wo (pre-transposed)
                full(1, D),                 # bo
            ],
            out_specs=[
                full(bs * S, D),
                full(bs, heads, S, S),
            ],
        ),
        compiler_params=pltpu.CompilerParams(
            dimension_semantics=("arbitrary",)),
    )(x_stack, w_stack, b_stack, wo_t, params["bo"])

    return out2d.reshape(bs, S, D), att


def _reference(q, k, v, params, *, heads):
    """Pure-JAX reference mirroring the PyTorch forward (mask=None, eval dropout)."""
    bs, S, D = q.shape
    d_k = D // heads

    def lin(x, w, b):
        return x @ w.T + b[0]

    qp = lin(q, params["wq"], params["bq"]).reshape(bs, S, heads, d_k).transpose(0, 2, 1, 3)
    kp = lin(k, params["wk"], params["bk"]).reshape(bs, S, heads, d_k).transpose(0, 2, 1, 3)
    vp = lin(v, params["wv"], params["bv"]).reshape(bs, S, heads, d_k).transpose(0, 2, 1, 3)

    scores = jnp.einsum("bhqd,bhkd->bhqk", qp, kp) / math.sqrt(d_k)
    scores = jax.nn.softmax(scores, axis=-1)
    o = jnp.einsum("bhqk,bhkd->bhqd", scores, vp)
    concat = o.transpose(0, 2, 1, 3).reshape(bs, S, D)
    out = lin(concat, params["wo"], params["bo"])
    return out, scores


def _init_params(key, d_model):
    """Deterministic nn.Linear-style init (uniform(-1/sqrt(fan_in), +1/sqrt(fan_in)))."""
    bound = 1.0 / math.sqrt(d_model)
    keys = jax.random.split(key, 8)

    def u(k, shape):
        return jax.random.uniform(k, shape, jnp.float32, -bound, bound)

    return {
        "wq": u(keys[0], (d_model, d_model)), "bq": u(keys[1], (1, d_model)),
        "wk": u(keys[2], (d_model, d_model)), "bk": u(keys[3], (1, d_model)),
        "wv": u(keys[4], (d_model, d_model)), "bv": u(keys[5], (1, d_model)),
        "wo": u(keys[6], (d_model, d_model)), "bo": u(keys[7], (1, d_model)),
    }


if __name__ == "__main__":
    BS, SEQ, D_MODEL, HEADS = 2, 8, 32, 4

    root = jax.random.PRNGKey(0)
    kq, kk, kv, kp = jax.random.split(root, 4)
    q = jax.random.normal(kq, (BS, SEQ, D_MODEL), jnp.float32)
    k = jax.random.normal(kk, (BS, SEQ, D_MODEL), jnp.float32)
    v = jax.random.normal(kv, (BS, SEQ, D_MODEL), jnp.float32)
    params = _init_params(kp, D_MODEL)

    out, att = multi_head_attention(q, k, v, params, heads=HEADS)
    out = jax.block_until_ready(out)
    att = jax.block_until_ready(att)

    ref_out, ref_att = _reference(q, k, v, params, heads=HEADS)
    assert out.shape == (BS, SEQ, D_MODEL)
    assert att.shape == (BS, HEADS, SEQ, SEQ)
    assert jnp.allclose(out, ref_out, atol=1e-4, rtol=1e-4)
    assert jnp.allclose(att, ref_att, atol=1e-4, rtol=1e-4)

    print("KERNEL_OK")
</pallas_src>

<mosaic_0001>
module attributes {stable_mosaic.version = 11 : i64} {
  func.func @_mha_kernel(%arg0: i32, %arg1: memref<3x16x32xf32, #tpu.memory_space<vmem>>, %arg2: memref<3x32x32xf32, #tpu.memory_space<vmem>>, %arg3: memref<3x1x32xf32, #tpu.memory_space<vmem>>, %arg4: memref<32x32xf32, #tpu.memory_space<vmem>>, %arg5: memref<1x32xf32, #tpu.memory_space<vmem>>, %arg6: memref<16x32xf32, #tpu.memory_space<vmem>>, %arg7: memref<2x4x8x8xf32, #tpu.memory_space<vmem>>) attributes {dimension_semantics = [#tpu.dimension_semantics<arbitrary>], iteration_bounds = array<i64: 1>, scalar_prefetch = 0 : i64, scratch_operands = 0 : i64, tpu.core_type = #tpu.core_type<tc>, window_params = [{pipeline_mode = #tpu.pipeline_mode<synchronous>, transform_indices = @transform_0, window_bounds = array<i64: 3, 16, 32>}, {pipeline_mode = #tpu.pipeline_mode<synchronous>, transform_indices = @transform_1, window_bounds = array<i64: 3, 32, 32>}, {pipeline_mode = #tpu.pipeline_mode<synchronous>, transform_indices = @transform_2, window_bounds = array<i64: 3, 1, 32>}, {pipeline_mode = #tpu.pipeline_mode<synchronous>, transform_indices = @transform_3, window_bounds = array<i64: 32, 32>}, {pipeline_mode = #tpu.pipeline_mode<synchronous>, transform_indices = @transform_4, window_bounds = array<i64: 1, 32>}, {pipeline_mode = #tpu.pipeline_mode<synchronous>, transform_indices = @transform_5, window_bounds = array<i64: 16, 32>}, {pipeline_mode = #tpu.pipeline_mode<synchronous>, transform_indices = @transform_6, window_bounds = array<i64: 2, 4, 8, 8>}]} {
    %c0 = arith.constant 0 : index
    %c0_0 = arith.constant 0 : index
    %c0_1 = arith.constant 0 : index
    %0 = vector.load %arg1[%c0, %c0_0, %c0_1] : memref<3x16x32xf32, #tpu.memory_space<vmem>>, vector<1x16x32xf32>
    %1 = vector.shape_cast %0 : vector<1x16x32xf32> to vector<16x32xf32>
    %c0_2 = arith.constant 0 : index
    %c0_3 = arith.constant 0 : index
    %c0_4 = arith.constant 0 : index
    %2 = vector.load %arg2[%c0_2, %c0_3, %c0_4] : memref<3x32x32xf32, #tpu.memory_space<vmem>>, vector<1x32x32xf32>
    %3 = vector.shape_cast %2 : vector<1x32x32xf32> to vector<32x32xf32>
    %cst = arith.constant dense<0.000000e+00> : vector<16x32xf32>
    %4 = tpu.matmul %1, %3, %cst {dimension_numbers = #tpu.dot_dimension_numbers<[1], [0], [0], [1], [0, 0, 1, 1], [], []>} : vector<16x32xf32>, vector<32x32xf32>, vector<16x32xf32> -> vector<16x32xf32>
    %c0_5 = arith.constant 0 : index
    %c0_6 = arith.constant 0 : index
    %c0_7 = arith.constant 0 : index
    %5 = vector.load %arg3[%c0_5, %c0_6, %c0_7] : memref<3x1x32xf32, #tpu.memory_space<vmem>>, vector<1x1x32xf32>
    %6 = vector.shape_cast %5 : vector<1x1x32xf32> to vector<1x32xf32>
    %7 = vector.broadcast %6 : vector<1x32xf32> to vector<16x32xf32>
    %8 = arith.addf %4, %7 : vector<16x32xf32>
    %c1 = arith.constant 1 : index
    %c0_8 = arith.constant 0 : index
    %c0_9 = arith.constant 0 : index
    %9 = vector.load %arg1[%c1, %c0_8, %c0_9] : memref<3x16x32xf32, #tpu.memory_space<vmem>>, vector<1x16x32xf32>
    %10 = vector.shape_cast %9 : vector<1x16x32xf32> to vector<16x32xf32>
    %c1_10 = arith.constant 1 : index
    %c0_11 = arith.constant 0 : index
    %c0_12 = arith.constant 0 : index
    %11 = vector.load %arg2[%c1_10, %c0_11, %c0_12] : memref<3x32x32xf32, #tpu.memory_space<vmem>>, vector<1x32x32xf32>
    %12 = vector.shape_cast %11 : vector<1x32x32xf32> to vector<32x32xf32>
    %cst_13 = arith.constant dense<0.000000e+00> : vector<16x32xf32>
    %13 = tpu.matmul %10, %12, %cst_13 {dimension_numbers = #tpu.dot_dimension_numbers<[1], [0], [0], [1], [0, 0, 1, 1], [], []>} : vector<16x32xf32>, vector<32x32xf32>, vector<16x32xf32> -> vector<16x32xf32>
    %c1_14 = arith.constant 1 : index
    %c0_15 = arith.constant 0 : index
    %c0_16 = arith.constant 0 : index
    %14 = vector.load %arg3[%c1_14, %c0_15, %c0_16] : memref<3x1x32xf32, #tpu.memory_space<vmem>>, vector<1x1x32xf32>
    %15 = vector.shape_cast %14 : vector<1x1x32xf32> to vector<1x32xf32>
    %16 = vector.broadcast %15 : vector<1x32xf32> to vector<16x32xf32>
    %17 = arith.addf %13, %16 : vector<16x32xf32>
    %c2 = arith.constant 2 : index
    %c0_17 = arith.constant 0 : index
    %c0_18 = arith.constant 0 : index
    %18 = vector.load %arg1[%c2, %c0_17, %c0_18] : memref<3x16x32xf32, #tpu.memory_space<vmem>>, vector<1x16x32xf32>
    %19 = vector.shape_cast %18 : vector<1x16x32xf32> to vector<16x32xf32>
    %c2_19 = arith.constant 2 : index
    %c0_20 = arith.constant 0 : index
    %c0_21 = arith.constant 0 : index
    %20 = vector.load %arg2[%c2_19, %c0_20, %c0_21] : memref<3x32x32xf32, #tpu.memory_space<vmem>>, vector<1x32x32xf32>
    %21 = vector.shape_cast %20 : vector<1x32x32xf32> to vector<32x32xf32>
    %cst_22 = arith.constant dense<0.000000e+00> : vector<16x32xf32>
    %22 = tpu.matmul %19, %21, %cst_22 {dimension_numbers = #tpu.dot_dimension_numbers<[1], [0], [0], [1], [0, 0, 1, 1], [], []>} : vector<16x32xf32>, vector<32x32xf32>, vector<16x32xf32> -> vector<16x32xf32>
    %c2_23 = arith.constant 2 : index
    %c0_24 = arith.constant 0 : index
    %c0_25 = arith.constant 0 : index
    %23 = vector.load %arg3[%c2_23, %c0_24, %c0_25] : memref<3x1x32xf32, #tpu.memory_space<vmem>>, vector<1x1x32xf32>
    %24 = vector.shape_cast %23 : vector<1x1x32xf32> to vector<1x32xf32>
    %25 = vector.broadcast %24 : vector<1x32xf32> to vector<16x32xf32>
    %26 = arith.addf %22, %25 : vector<16x32xf32>
    %c0_26 = arith.constant 0 : index
    %c0_27 = arith.constant 0 : index
    %27 = vector.load %arg4[%c0_26, %c0_27] : memref<32x32xf32, #tpu.memory_space<vmem>>, vector<32x32xf32>
    %c0_28 = arith.constant 0 : index
    %c0_29 = arith.constant 0 : index
    %28 = vector.load %arg5[%c0_28, %c0_29] : memref<1x32xf32, #tpu.memory_space<vmem>>, vector<1x32xf32>
    %29 = vector.extract_strided_slice %8 {offsets = [0, 0], sizes = [8, 32], strides = [1, 1]} : vector<16x32xf32> to vector<8x32xf32>
    %30 = vector.extract_strided_slice %17 {offsets = [0, 0], sizes = [8, 32], strides = [1, 1]} : vector<16x32xf32> to vector<8x32xf32>
    %31 = vector.extract_strided_slice %26 {offsets = [0, 0], sizes = [8, 32], strides = [1, 1]} : vector<16x32xf32> to vector<8x32xf32>
    %32 = vector.extract_strided_slice %29 {offsets = [0, 0], sizes = [8, 8], strides = [1, 1]} : vector<8x32xf32> to vector<8x8xf32>
    %33 = vector.extract_strided_slice %30 {offsets = [0, 0], sizes = [8, 8], strides = [1, 1]} : vector<8x32xf32> to vector<8x8xf32>
    %34 = vector.extract_strided_slice %31 {offsets = [0, 0], sizes = [8, 8], strides = [1, 1]} : vector<8x32xf32> to vector<8x8xf32>
    %cst_30 = arith.constant dense<0.000000e+00> : vector<8x8xf32>
    %35 = tpu.matmul %32, %33, %cst_30 {dimension_numbers = #tpu.dot_dimension_numbers<[1], [1], [0], [0], [0, 0, 1, 0], [], []>} : vector<8x8xf32>, vector<8x8xf32>, vector<8x8xf32> -> vector<8x8xf32>
    %cst_31 = arith.constant dense<0xFF800000> : vector<8xf32>
    %36 = vector.multi_reduction <maximumf>, %35, %cst_31 [1] : vector<8x8xf32> to vector<8xf32>
    %37 = vector.shape_cast %36 : vector<8xf32> to vector<8x1xf32>
    %38 = vector.broadcast %37 : vector<8x1xf32> to vector<8x8xf32>
    %39 = arith.subf %35, %38 : vector<8x8xf32>
    %40 = math.exp %39 : vector<8x8xf32>
    %cst_32 = arith.constant dense<0.000000e+00> : vector<8xf32>
    %41 = vector.multi_reduction <add>, %40, %cst_32 [1] : vector<8x8xf32> to vector<8xf32>
    %42 = vector.shape_cast %41 : vector<8xf32> to vector<8x1xf32>
    %43 = vector.broadcast %42 : vector<8x1xf32> to vector<8x8xf32>
    %44 = arith.divf %40, %43 : vector<8x8xf32>
    %cst_33 = arith.constant dense<0.000000e+00> : vector<8x8xf32>
    %45 = tpu.matmul %44, %34, %cst_33 {dimension_numbers = #tpu.dot_dimension_numbers<[1], [0], [0], [1], [0, 0, 1, 1], [], []>} : vector<8x8xf32>, vector<8x8xf32>, vector<8x8xf32> -> vector<8x8xf32>
    %46 = vector.extract_strided_slice %27 {offsets = [0, 0], sizes = [8, 32], strides = [1, 1]} : vector<32x32xf32> to vector<8x32xf32>
    %cst_34 = arith.constant dense<0.000000e+00> : vector<8x32xf32>
    %47 = tpu.matmul %45, %46, %cst_34 {dimension_numbers = #tpu.dot_dimension_numbers<[1], [0], [0], [1], [0, 0, 1, 1], [], []>} : vector<8x8xf32>, vector<8x32xf32>, vector<8x32xf32> -> vector<8x32xf32>
    %48 = vector.extract_strided_slice %29 {offsets = [0, 8], sizes = [8, 8], strides = [1, 1]} : vector<8x32xf32> to vector<8x8xf32>
    %49 = vector.extract_strided_slice %30 {offsets = [0, 8], sizes = [8, 8], strides = [1, 1]} : vector<8x32xf32> to vector<8x8xf32>
    %50 = vector.extract_strided_slice %31 {offsets = [0, 8], sizes = [8, 8], strides = [1, 1]} : vector<8x32xf32> to vector<8x8xf32>
    %cst_35 = arith.constant dense<0.000000e+00> : vector<8x8xf32>
    %51 = tpu.matmul %48, %49, %cst_35 {dimension_numbers = #tpu.dot_dimension_numbers<[1], [1], [0], [0], [0, 0, 1, 0], [], []>} : vector<8x8xf32>, vector<8x8xf32>, vector<8x8xf32> -> vector<8x8xf32>
    %cst_36 = arith.constant dense<0xFF800000> : vector<8xf32>
    %52 = vector.multi_reduction <maximumf>, %51, %cst_36 [1] : vector<8x8xf32> to vector<8xf32>
    %53 = vector.shape_cast %52 : vector<8xf32> to vector<8x1xf32>
    %54 = vector.broadcast %53 : vector<8x1xf32> to vector<8x8xf32>
    %55 = arith.subf %51, %54 : vector<8x8xf32>
    %56 = math.exp %55 : vector<8x8xf32>
    %cst_37 = arith.constant dense<0.000000e+00> : vector<8xf32>
    %57 = vector.multi_reduction <add>, %56, %cst_37 [1] : vector<8x8xf32> to vector<8xf32>
    %58 = vector.shape_cast %57 : vector<8xf32> to vector<8x1xf32>
    %59 = vector.broadcast %58 : vector<8x1xf32> to vector<8x8xf32>
    %60 = arith.divf %56, %59 : vector<8x8xf32>
    %cst_38 = arith.constant dense<0.000000e+00> : vector<8x8xf32>
    %61 = tpu.matmul %60, %50, %cst_38 {dimension_numbers = #tpu.dot_dimension_numbers<[1], [0], [0], [1], [0, 0, 1, 1], [], []>} : vector<8x8xf32>, vector<8x8xf32>, vector<8x8xf32> -> vector<8x8xf32>
    %62 = vector.extract_strided_slice %27 {offsets = [8, 0], sizes = [8, 32], strides = [1, 1]} : vector<32x32xf32> to vector<8x32xf32>
    %cst_39 = arith.constant dense<0.000000e+00> : vector<8x32xf32>
    %63 = tpu.matmul %61, %62, %cst_39 {dimension_numbers = #tpu.dot_dimension_numbers<[1], [0], [0], [1], [0, 0, 1, 1], [], []>} : vector<8x8xf32>, vector<8x32xf32>, vector<8x32xf32> -> vector<8x32xf32>
    %64 = arith.addf %47, %63 : vector<8x32xf32>
    %65 = vector.extract_strided_slice %29 {offsets = [0, 16], sizes = [8, 8], strides = [1, 1]} : vector<8x32xf32> to vector<8x8xf32>
    %66 = vector.extract_strided_slice %30 {offsets = [0, 16], sizes = [8, 8], strides = [1, 1]} : vector<8x32xf32> to vector<8x8xf32>
    %67 = vector.extract_strided_slice %31 {offsets = [0, 16], sizes = [8, 8], strides = [1, 1]} : vector<8x32xf32> to vector<8x8xf32>
    %cst_40 = arith.constant dense<0.000000e+00> : vector<8x8xf32>
    %68 = tpu.matmul %65, %66, %cst_40 {dimension_numbers = #tpu.dot_dimension_numbers<[1], [1], [0], [0], [0, 0, 1, 0], [], []>} : vector<8x8xf32>, vector<8x8xf32>, vector<8x8xf32> -> vector<8x8xf32>
    %cst_41 = arith.constant dense<0xFF800000> : vector<8xf32>
    %69 = vector.multi_reduction <maximumf>, %68, %cst_41 [1] : vector<8x8xf32> to vector<8xf32>
    %70 = vector.shape_cast %69 : vector<8xf32> to vector<8x1xf32>
    %71 = vector.broadcast %70 : vector<8x1xf32> to vector<8x8xf32>
    %72 = arith.subf %68, %71 : vector<8x8xf32>
    %73 = math.exp %72 : vector<8x8xf32>
    %cst_42 = arith.constant dense<0.000000e+00> : vector<8xf32>
    %74 = vector.multi_reduction <add>, %73, %cst_42 [1] : vector<8x8xf32> to vector<8xf32>
    %75 = vector.shape_cast %74 : vector<8xf32> to vector<8x1xf32>
    %76 = vector.broadcast %75 : vector<8x1xf32> to vector<8x8xf32>
    %77 = arith.divf %73, %76 : vector<8x8xf32>
    %cst_43 = arith.constant dense<0.000000e+00> : vector<8x8xf32>
    %78 = tpu.matmul %77, %67, %cst_43 {dimension_numbers = #tpu.dot_dimension_numbers<[1], [0], [0], [1], [0, 0, 1, 1], [], []>} : vector<8x8xf32>, vector<8x8xf32>, vector<8x8xf32> -> vector<8x8xf32>
    %79 = vector.extract_strided_slice %27 {offsets = [16, 0], sizes = [8, 32], strides = [1, 1]} : vector<32x32xf32> to vector<8x32xf32>
    %cst_44 = arith.constant dense<0.000000e+00> : vector<8x32xf32>
    %80 = tpu.matmul %78, %79, %cst_44 {dimension_numbers = #tpu.dot_dimension_numbers<[1], [0], [0], [1], [0, 0, 1, 1], [], []>} : vector<8x8xf32>, vector<8x32xf32>, vector<8x32xf32> -> vector<8x32xf32>
    %81 = arith.addf %64, %80 : vector<8x32xf32>
    %82 = vector.extract_strided_slice %29 {offsets = [0, 24], sizes = [8, 8], strides = [1, 1]} : vector<8x32xf32> to vector<8x8xf32>
    %83 = vector.extract_strided_slice %30 {offsets = [0, 24], sizes = [8, 8], strides = [1, 1]} : vector<8x32xf32> to vector<8x8xf32>
    %84 = vector.extract_strided_slice %31 {offsets = [0, 24], sizes = [8, 8], strides = [1, 1]} : vector<8x32xf32> to vector<8x8xf32>
    %cst_45 = arith.constant dense<0.000000e+00> : vector<8x8xf32>
    %85 = tpu.matmul %82, %83, %cst_45 {dimension_numbers = #tpu.dot_dimension_numbers<[1], [1], [0], [0], [0, 0, 1, 0], [], []>} : vector<8x8xf32>, vector<8x8xf32>, vector<8x8xf32> -> vector<8x8xf32>
    %cst_46 = arith.constant dense<0xFF800000> : vector<8xf32>
    %86 = vector.multi_reduction <maximumf>, %85, %cst_46 [1] : vector<8x8xf32> to vector<8xf32>
    %87 = vector.shape_cast %86 : vector<8xf32> to vector<8x1xf32>
    %88 = vector.broadcast %87 : vector<8x1xf32> to vector<8x8xf32>
    %89 = arith.subf %85, %88 : vector<8x8xf32>
    %90 = math.exp %89 : vector<8x8xf32>
    %cst_47 = arith.constant dense<0.000000e+00> : vector<8xf32>
    %91 = vector.multi_reduction <add>, %90, %cst_47 [1] : vector<8x8xf32> to vector<8xf32>
    %92 = vector.shape_cast %91 : vector<8xf32> to vector<8x1xf32>
    %93 = vector.broadcast %92 : vector<8x1xf32> to vector<8x8xf32>
    %94 = arith.divf %90, %93 : vector<8x8xf32>
    %cst_48 = arith.constant dense<0.000000e+00> : vector<8x8xf32>
    %95 = tpu.matmul %94, %84, %cst_48 {dimension_numbers = #tpu.dot_dimension_numbers<[1], [0], [0], [1], [0, 0, 1, 1], [], []>} : vector<8x8xf32>, vector<8x8xf32>, vector<8x8xf32> -> vector<8x8xf32>
    %96 = vector.extract_strided_slice %27 {offsets = [24, 0], sizes = [8, 32], strides = [1, 1]} : vector<32x32xf32> to vector<8x32xf32>
    %cst_49 = arith.constant dense<0.000000e+00> : vector<8x32xf32>
    %97 = tpu.matmul %95, %96, %cst_49 {dimension_numbers = #tpu.dot_dimension_numbers<[1], [0], [0], [1], [0, 0, 1, 1], [], []>} : vector<8x8xf32>, vector<8x32xf32>, vector<8x32xf32> -> vector<8x32xf32>
    %98 = arith.addf %81, %97 : vector<8x32xf32>
    %99 = vector.broadcast %28 : vector<1x32xf32> to vector<8x32xf32>
    %100 = arith.addf %98, %99 : vector<8x32xf32>
    %101 = vector.shape_cast %44 : vector<8x8xf32> to vector<1x8x8xf32>
    %102 = vector.shape_cast %60 : vector<8x8xf32> to vector<1x8x8xf32>
    %103 = vector.shape_cast %77 : vector<8x8xf32> to vector<1x8x8xf32>
    %104 = vector.shape_cast %94 : vector<8x8xf32> to vector<1x8x8xf32>
    %105 = tpu.concatenate %101, %102, %103, %104 in 0 : vector<1x8x8xf32>, vector<1x8x8xf32>, vector<1x8x8xf32>, vector<1x8x8xf32> -> vector<4x8x8xf32>
    %c0_50 = arith.constant 0 : index
    %c0_51 = arith.constant 0 : index
    %c0_52 = arith.constant 0 : index
    %c0_53 = arith.constant 0 : index
    %106 = vector.load %arg7[%c0_50, %c0_51, %c0_52, %c0_53] : memref<2x4x8x8xf32, #tpu.memory_space<vmem>>, vector<1x4x8x8xf32>
    %107 = vector.shape_cast %106 : vector<1x4x8x8xf32> to vector<4x8x8xf32>
    %108 = vector.shape_cast %105 : vector<4x8x8xf32> to vector<1x4x8x8xf32>
    tpu.vector_store %arg7[%c0_50, %c0_51, %c0_52, %c0_53], %108 {strides = array<i32>} : memref<2x4x8x8xf32, #tpu.memory_space<vmem>>, vector<1x4x8x8xf32>,
    %109 = vector.extract_strided_slice %8 {offsets = [8, 0], sizes = [8, 32], strides = [1, 1]} : vector<16x32xf32> to vector<8x32xf32>
    %110 = vector.extract_strided_slice %17 {offsets = [8, 0], sizes = [8, 32], strides = [1, 1]} : vector<16x32xf32> to vector<8x32xf32>
    %111 = vector.extract_strided_slice %26 {offsets = [8, 0], sizes = [8, 32], strides = [1, 1]} : vector<16x32xf32> to vector<8x32xf32>
    %112 = vector.extract_strided_slice %109 {offsets = [0, 0], sizes = [8, 8], strides = [1, 1]} : vector<8x32xf32> to vector<8x8xf32>
    %113 = vector.extract_strided_slice %110 {offsets = [0, 0], sizes = [8, 8], strides = [1, 1]} : vector<8x32xf32> to vector<8x8xf32>
    %114 = vector.extract_strided_slice %111 {offsets = [0, 0], sizes = [8, 8], strides = [1, 1]} : vector<8x32xf32> to vector<8x8xf32>
    %cst_54 = arith.constant dense<0.000000e+00> : vector<8x8xf32>
    %115 = tpu.matmul %112, %113, %cst_54 {dimension_numbers = #tpu.dot_dimension_numbers<[1], [1], [0], [0], [0, 0, 1, 0], [], []>} : vector<8x8xf32>, vector<8x8xf32>, vector<8x8xf32> -> vector<8x8xf32>
    %cst_55 = arith.constant dense<0xFF800000> : vector<8xf32>
    %116 = vector.multi_reduction <maximumf>, %115, %cst_55 [1] : vector<8x8xf32> to vector<8xf32>
    %117 = vector.shape_cast %116 : vector<8xf32> to vector<8x1xf32>
    %118 = vector.broadcast %117 : vector<8x1xf32> to vector<8x8xf32>
    %119 = arith.subf %115, %118 : vector<8x8xf32>
    %120 = math.exp %119 : vector<8x8xf32>
    %cst_56 = arith.constant dense<0.000000e+00> : vector<8xf32>
    %121 = vector.multi_reduction <add>, %120, %cst_56 [1] : vector<8x8xf32> to vector<8xf32>
    %122 = vector.shape_cast %121 : vector<8xf32> to vector<8x1xf32>
    %123 = vector.broadcast %122 : vector<8x1xf32> to vector<8x8xf32>
    %124 = arith.divf %120, %123 : vector<8x8xf32>
    %cst_57 = arith.constant dense<0.000000e+00> : vector<8x8xf32>
    %125 = tpu.matmul %124, %114, %cst_57 {dimension_numbers = #tpu.dot_dimension_numbers<[1], [0], [0], [1], [0, 0, 1, 1], [], []>} : vector<8x8xf32>, vector<8x8xf32>, vector<8x8xf32> -> vector<8x8xf32>
    %126 = vector.extract_strided_slice %27 {offsets = [0, 0], sizes = [8, 32], strides = [1, 1]} : vector<32x32xf32> to vector<8x32xf32>
    %cst_58 = arith.constant dense<0.000000e+00> : vector<8x32xf32>
    %127 = tpu.matmul %125, %126, %cst_58 {dimension_numbers = #tpu.dot_dimension_numbers<[1], [0], [0], [1], [0, 0, 1, 1], [], []>} : vector<8x8xf32>, vector<8x32xf32>, vector<8x32xf32> -> vector<8x32xf32>
    %128 = vector.extract_strided_slice %109 {offsets = [0, 8], sizes = [8, 8], strides = [1, 1]} : vector<8x32xf32> to vector<8x8xf32>
    %129 = vector.extract_strided_slice %110 {offsets = [0, 8], sizes = [8, 8], strides = [1, 1]} : vector<8x32xf32> to vector<8x8xf32>
    %130 = vector.extract_strided_slice %111 {offsets = [0, 8], sizes = [8, 8], strides = [1, 1]} : vector<8x32xf32> to vector<8x8xf32>
    %cst_59 = arith.constant dense<0.000000e+00> : vector<8x8xf32>
    %131 = tpu.matmul %128, %129, %cst_59 {dimension_numbers = #tpu.dot_dimension_numbers<[1], [1], [0], [0], [0, 0, 1, 0], [], []>} : vector<8x8xf32>, vector<8x8xf32>, vector<8x8xf32> -> vector<8x8xf32>
    %cst_60 = arith.constant dense<0xFF800000> : vector<8xf32>
    %132 = vector.multi_reduction <maximumf>, %131, %cst_60 [1] : vector<8x8xf32> to vector<8xf32>
    %133 = vector.shape_cast %132 : vector<8xf32> to vector<8x1xf32>
    %134 = vector.broadcast %133 : vector<8x1xf32> to vector<8x8xf32>
    %135 = arith.subf %131, %134 : vector<8x8xf32>
    %136 = math.exp %135 : vector<8x8xf32>
    %cst_61 = arith.constant dense<0.000000e+00> : vector<8xf32>
    %137 = vector.multi_reduction <add>, %136, %cst_61 [1] : vector<8x8xf32> to vector<8xf32>
    %138 = vector.shape_cast %137 : vector<8xf32> to vector<8x1xf32>
    %139 = vector.broadcast %138 : vector<8x1xf32> to vector<8x8xf32>
    %140 = arith.divf %136, %139 : vector<8x8xf32>
    %cst_62 = arith.constant dense<0.000000e+00> : vector<8x8xf32>
    %141 = tpu.matmul %140, %130, %cst_62 {dimension_numbers = #tpu.dot_dimension_numbers<[1], [0], [0], [1], [0, 0, 1, 1], [], []>} : vector<8x8xf32>, vector<8x8xf32>, vector<8x8xf32> -> vector<8x8xf32>
    %142 = vector.extract_strided_slice %27 {offsets = [8, 0], sizes = [8, 32], strides = [1, 1]} : vector<32x32xf32> to vector<8x32xf32>
    %cst_63 = arith.constant dense<0.000000e+00> : vector<8x32xf32>
    %143 = tpu.matmul %141, %142, %cst_63 {dimension_numbers = #tpu.dot_dimension_numbers<[1], [0], [0], [1], [0, 0, 1, 1], [], []>} : vector<8x8xf32>, vector<8x32xf32>, vector<8x32xf32> -> vector<8x32xf32>
    %144 = arith.addf %127, %143 : vector<8x32xf32>
    %145 = vector.extract_strided_slice %109 {offsets = [0, 16], sizes = [8, 8], strides = [1, 1]} : vector<8x32xf32> to vector<8x8xf32>
    %146 = vector.extract_strided_slice %110 {offsets = [0, 16], sizes = [8, 8], strides = [1, 1]} : vector<8x32xf32> to vector<8x8xf32>
    %147 = vector.extract_strided_slice %111 {offsets = [0, 16], sizes = [8, 8], strides = [1, 1]} : vector<8x32xf32> to vector<8x8xf32>
    %cst_64 = arith.constant dense<0.000000e+00> : vector<8x8xf32>
    %148 = tpu.matmul %145, %146, %cst_64 {dimension_numbers = #tpu.dot_dimension_numbers<[1], [1], [0], [0], [0, 0, 1, 0], [], []>} : vector<8x8xf32>, vector<8x8xf32>, vector<8x8xf32> -> vector<8x8xf32>
    %cst_65 = arith.constant dense<0xFF800000> : vector<8xf32>
    %149 = vector.multi_reduction <maximumf>, %148, %cst_65 [1] : vector<8x8xf32> to vector<8xf32>
    %150 = vector.shape_cast %149 : vector<8xf32> to vector<8x1xf32>
    %151 = vector.broadcast %150 : vector<8x1xf32> to vector<8x8xf32>
    %152 = arith.subf %148, %151 : vector<8x8xf32>
    %153 = math.exp %152 : vector<8x8xf32>
    %cst_66 = arith.constant dense<0.000000e+00> : vector<8xf32>
    %154 = vector.multi_reduction <add>, %153, %cst_66 [1] : vector<8x8xf32> to vector<8xf32>
    %155 = vector.shape_cast %154 : vector<8xf32> to vector<8x1xf32>
    %156 = vector.broadcast %155 : vector<8x1xf32> to vector<8x8xf32>
    %157 = arith.divf %153, %156 : vector<8x8xf32>
    %cst_67 = arith.constant dense<0.000000e+00> : vector<8x8xf32>
    %158 = tpu.matmul %157, %147, %cst_67 {dimension_numbers = #tpu.dot_dimension_numbers<[1], [0], [0], [1], [0, 0, 1, 1], [], []>} : vector<8x8xf32>, vector<8x8xf32>, vector<8x8xf32> -> vector<8x8xf32>
    %159 = vector.extract_strided_slice %27 {offsets = [16, 0], sizes = [8, 32], strides = [1, 1]} : vector<32x32xf32> to vector<8x32xf32>
    %cst_68 = arith.constant dense<0.000000e+00> : vector<8x32xf32>
    %160 = tpu.matmul %158, %159, %cst_68 {dimension_numbers = #tpu.dot_dimension_numbers<[1], [0], [0], [1], [0, 0, 1, 1], [], []>} : vector<8x8xf32>, vector<8x32xf32>, vector<8x32xf32> -> vector<8x32xf32>
    %161 = arith.addf %144, %160 : vector<8x32xf32>
    %162 = vector.extract_strided_slice %109 {offsets = [0, 24], sizes = [8, 8], strides = [1, 1]} : vector<8x32xf32> to vector<8x8xf32>
    %163 = vector.extract_strided_slice %110 {offsets = [0, 24], sizes = [8, 8], strides = [1, 1]} : vector<8x32xf32> to vector<8x8xf32>
    %164 = vector.extract_strided_slice %111 {offsets = [0, 24], sizes = [8, 8], strides = [1, 1]} : vector<8x32xf32> to vector<8x8xf32>
    %cst_69 = arith.constant dense<0.000000e+00> : vector<8x8xf32>
    %165 = tpu.matmul %162, %163, %cst_69 {dimension_numbers = #tpu.dot_dimension_numbers<[1], [1], [0], [0], [0, 0, 1, 0], [], []>} : vector<8x8xf32>, vector<8x8xf32>, vector<8x8xf32> -> vector<8x8xf32>
    %cst_70 = arith.constant dense<0xFF800000> : vector<8xf32>
    %166 = vector.multi_reduction <maximumf>, %165, %cst_70 [1] : vector<8x8xf32> to vector<8xf32>
    %167 = vector.shape_cast %166 : vector<8xf32> to vector<8x1xf32>
    %168 = vector.broadcast %167 : vector<8x1xf32> to vector<8x8xf32>
    %169 = arith.subf %165, %168 : vector<8x8xf32>
    %170 = math.exp %169 : vector<8x8xf32>
    %cst_71 = arith.constant dense<0.000000e+00> : vector<8xf32>
    %171 = vector.multi_reduction <add>, %170, %cst_71 [1] : vector<8x8xf32> to vector<8xf32>
    %172 = vector.shape_cast %171 : vector<8xf32> to vector<8x1xf32>
    %173 = vector.broadcast %172 : vector<8x1xf32> to vector<8x8xf32>
    %174 = arith.divf %170, %173 : vector<8x8xf32>
    %cst_72 = arith.constant dense<0.000000e+00> : vector<8x8xf32>
    %175 = tpu.matmul %174, %164, %cst_72 {dimension_numbers = #tpu.dot_dimension_numbers<[1], [0], [0], [1], [0, 0, 1, 1], [], []>} : vector<8x8xf32>, vector<8x8xf32>, vector<8x8xf32> -> vector<8x8xf32>
    %176 = vector.extract_strided_slice %27 {offsets = [24, 0], sizes = [8, 32], strides = [1, 1]} : vector<32x32xf32> to vector<8x32xf32>
    %cst_73 = arith.constant dense<0.000000e+00> : vector<8x32xf32>
    %177 = tpu.matmul %175, %176, %cst_73 {dimension_numbers = #tpu.dot_dimension_numbers<[1], [0], [0], [1], [0, 0, 1, 1], [], []>} : vector<8x8xf32>, vector<8x32xf32>, vector<8x32xf32> -> vector<8x32xf32>
    %178 = arith.addf %161, %177 : vector<8x32xf32>
    %179 = vector.broadcast %28 : vector<1x32xf32> to vector<8x32xf32>
    %180 = arith.addf %178, %179 : vector<8x32xf32>
    %181 = vector.shape_cast %124 : vector<8x8xf32> to vector<1x8x8xf32>
    %182 = vector.shape_cast %140 : vector<8x8xf32> to vector<1x8x8xf32>
    %183 = vector.shape_cast %157 : vector<8x8xf32> to vector<1x8x8xf32>
    %184 = vector.shape_cast %174 : vector<8x8xf32> to vector<1x8x8xf32>
    %185 = tpu.concatenate %181, %182, %183, %184 in 0 : vector<1x8x8xf32>, vector<1x8x8xf32>, vector<1x8x8xf32>, vector<1x8x8xf32> -> vector<4x8x8xf32>
    %c1_74 = arith.constant 1 : index
    %c0_75 = arith.constant 0 : index
    %c0_76 = arith.constant 0 : index
    %c0_77 = arith.constant 0 : index
    %186 = vector.load %arg7[%c1_74, %c0_75, %c0_76, %c0_77] : memref<2x4x8x8xf32, #tpu.memory_space<vmem>>, vector<1x4x8x8xf32>
    %187 = vector.shape_cast %186 : vector<1x4x8x8xf32> to vector<4x8x8xf32>
    %188 = vector.shape_cast %185 : vector<4x8x8xf32> to vector<1x4x8x8xf32>
    tpu.vector_store %arg7[%c1_74, %c0_75, %c0_76, %c0_77], %188 {strides = array<i32>} : memref<2x4x8x8xf32, #tpu.memory_space<vmem>>, vector<1x4x8x8xf32>,
    %189 = tpu.concatenate %100, %180 in 0 : vector<8x32xf32>, vector<8x32xf32> -> vector<16x32xf32>
    %c0_78 = arith.constant 0 : index
    %c0_79 = arith.constant 0 : index
    %190 = vector.load %arg6[%c0_78, %c0_79] : memref<16x32xf32, #tpu.memory_space<vmem>>, vector<16x32xf32>
    tpu.vector_store %arg6[%c0_78, %c0_79], %189 {strides = array<i32>} : memref<16x32xf32, #tpu.memory_space<vmem>>, vector<16x32xf32>,
    return
  }
  func.func @transform_0(%arg0: i32) -> (i32, i32, i32) {
    %c0_i32 = arith.constant 0 : i32
    %c0_i32_0 = arith.constant 0 : i32
    %c0_i32_1 = arith.constant 0 : i32
    %c0_i32_2 = arith.constant 0 : i32
    return %c0_i32, %c0_i32_0, %c0_i32_1 : i32, i32, i32
  }
  func.func @transform_1(%arg0: i32) -> (i32, i32, i32) {
    %c0_i32 = arith.constant 0 : i32
    %c0_i32_0 = arith.constant 0 : i32
    %c0_i32_1 = arith.constant 0 : i32
    %c0_i32_2 = arith.constant 0 : i32
    return %c0_i32, %c0_i32_0, %c0_i32_1 : i32, i32, i32
  }
  func.func @transform_2(%arg0: i32) -> (i32, i32, i32) {
    %c0_i32 = arith.constant 0 : i32
    %c0_i32_0 = arith.constant 0 : i32
    %c0_i32_1 = arith.constant 0 : i32
    %c0_i32_2 = arith.constant 0 : i32
    return %c0_i32, %c0_i32_0, %c0_i32_1 : i32, i32, i32
  }
  func.func @transform_3(%arg0: i32) -> (i32, i32) {
    %c0_i32 = arith.constant 0 : i32
    %c0_i32_0 = arith.constant 0 : i32
    %c0_i32_1 = arith.constant 0 : i32
    return %c0_i32, %c0_i32_0 : i32, i32
  }
  func.func @transform_4(%arg0: i32) -> (i32, i32) {
    %c0_i32 = arith.constant 0 : i32
    %c0_i32_0 = arith.constant 0 : i32
    %c0_i32_1 = arith.constant 0 : i32
    return %c0_i32, %c0_i32_0 : i32, i32
  }
  func.func @transform_5(%arg0: i32) -> (i32, i32) {
    %c0_i32 = arith.constant 0 : i32
    %c0_i32_0 = arith.constant 0 : i32
    %c0_i32_1 = arith.constant 0 : i32
    return %c0_i32, %c0_i32_0 : i32, i32
  }
  func.func @transform_6(%arg0: i32) -> (i32, i32, i32, i32) {
    %c0_i32 = arith.constant 0 : i32
    %c0_i32_0 = arith.constant 0 : i32
    %c0_i32_1 = arith.constant 0 : i32
    %c0_i32_2 = arith.constant 0 : i32
    %c0_i32_3 = arith.constant 0 : i32
    return %c0_i32, %c0_i32_0, %c0_i32_1, %c0_i32_2 : i32, i32, i32, i32
  }
}

</mosaic_0001>

<bundles_post_ra>
// kernel: tpu_custom_call.1
= control target key start
LH: loop header
LB: loop body
LE: loop exit
PB: predicated region body
PF: predicated region fallthrough
CT: control target
= control target key end

     0   :  { %12 = vsyncpa [#allocation3], 0  ;;  %s3027_s0 = inlined_call_operand.hbm [shape: f32[3,16,32], index: 0, kind: input, shape index: {}]   ;;  %s3028_s1 = inlined_call_operand.hbm [shape: f32[3,32,32], index: 1, kind: input, shape index: {}]   ;;  %s3029_s2 = inlined_call_operand.vmem [shape: f32[3,1,32], index: 2, kind: input, shape index: {}]   ;;  %s3030_s3 = inlined_call_operand.hbm [shape: f32[32,32], index: 3, kind: input, shape index: {}]   ;;  %s3031_s4 = inlined_call_operand.vmem [shape: f32[1,32], index: 4, kind: input, shape index: {}]   ;;  %s3032_s5 = inlined_call_operand.hbm [shape: f32[16,32], index: 5, kind: output, shape index: {0}]   ;;  %s3033_s6 = inlined_call_operand.hbm [shape: f32[2,4,8,8], index: 6, kind: output, shape index: {1}]  }
   0x1   :  { %13 = vsyncpa [#allocation6], 0 }
   0x2   :  { %14 = vsyncpa [#allocation4], 0 }
   0x3   :  { %15 = vsyncpa [#allocation10], 0  ;;  %s2728_s21 = smov [#allocation5]   ;;  %s2729_s23 = smov [#allocation2]  }
   0x4   :  { %s33_s22 = sshll.u32 %s2728_s21, 4  ;;  %s21_s24 = sshll.u32 %s2729_s23, 4  ;;  %s34_s22 = int_to_ptr.vmem [resolvable:$true] %s33_s22  ;;  %s22_s24 = int_to_ptr.vmem [resolvable:$true] %s21_s24 }
   0x5   :  { %s2628_s25 = scalar_lea.vmem %s34_s22, 1536  ;;  %p2633_p1 = scmp.lt.s32.totalorder %s34_s22, %s34_s22 }
   0x6   :  { %p2629_p0 = scmp.ne.s32.totalorder %s34_s22, %s2628_s25  ;;  %p2634_p2 = scmp.lt.s32.totalorder %s2628_s25, %s2628_s25 }
   0x8   :  { %p2635_p3 = por %p2634_p2, %p2633_p1 }
   0xa   :  { %p2636_p4 = pnand %p2635_p3, %p2629_p0 }
   0xc   :  { %2639 = shalt.err (!%p2636_p4)
}
   0xd   :  { %s2730_s26 = smov 128   ;;  %s2731_s27 = smov 8  }
   0xe   :  { %39 = dma.hbm_to_vmem [thread:$0]  %s3028_s1, 1536, %s34_s22, [#allocation6], %s2730_s26, %s2730_s26, %s2731_s27  }
   0xf   :  { %s2648_s30 = scalar_lea.vmem %s22_s24, 768  ;;  %p2653_p6 = scmp.lt.s32.totalorder %s22_s24, %s22_s24 }
  0x10   :  { %p2649_p5 = scmp.ne.s32.totalorder %s22_s24, %s2648_s30  ;;  %p2654_p7 = scmp.lt.s32.totalorder %s2648_s30, %s2648_s30 }
  0x12   :  { %p2655_p8 = por %p2654_p7, %p2653_p6 }
  0x14   :  { %p2656_p9 = pnand %p2655_p8, %p2649_p5 }
  0x16   :  { %2659 = shalt.err (!%p2656_p9)
}
  0x17   :  { %27 = dma.hbm_to_vmem [thread:$0]  %s3027_s0, 768, %s22_s24, [#allocation3], %s2730_s26, %s2730_s26, %s2731_s27  }
  0x18   :  { %s2732_s9 = smov [#allocation7]  }
  0x19   :  { %s47_s10 = sshll.u32 %s2732_s9, 4  ;;  %s48_s10 = int_to_ptr.vmem [resolvable:$true] %s47_s10 }
  0x1a   :  { %s2668_s11 = scalar_lea.vmem %s48_s10, 512  ;;  %p2673_p11 = scmp.lt.s32.totalorder %s48_s10, %s48_s10 }
  0x1b   :  { %p2669_p10 = scmp.ne.s32.totalorder %s48_s10, %s2668_s11  ;;  %p2674_p12 = scmp.lt.s32.totalorder %s2668_s11, %s2668_s11 }
  0x1d   :  { %p2675_p13 = por %p2674_p12, %p2673_p11 }
  0x1f   :  { %p2676_p0 = pnand %p2675_p13, %p2669_p10 }
  0x21   :  { %2679 = shalt.err (!%p2676_p0)
}
  0x22   :  { %53 = dma.hbm_to_vmem [thread:$0]  %s3030_s3, 512, %s48_s10, [#allocation6], %s2730_s26, %s2730_s26, %s2731_s27  }
  0x23   :  { %2720 = dma.done.wait [#allocation3], 768  }
  0x24   :  { %2721 = vsyncadd [#allocation3], 4294966528 }
  0x25   :  { %2722 = dma.done.wait [#allocation6], 2048  }
  0x26   :  { %2723 = vsyncadd [#allocation6], 4294965248  ;;  %v167_v0 = vld [vmem:[#allocation5 + $0x38] sm:$0xff]  ;;  %v166_v2 = vld [vmem:[#allocation5 + $0x30] sm:$0xff]  ;;  %vm78_vm0 = vcmask 261120   ;;  %v2733_v12 = vmov 0.0  }
  0x27   :  { %v70_v1 = vld [vmem:[#allocation5 + $0x18] sm:$0xff]  ;;  %2434 = vmatprep.subr.mxu1 %v167_v0  ;;  %v69_v3 = vld [vmem:[#allocation5 + $0x10] sm:$0xff]  ;;  %v165_v4 = vld [vmem:[#allocation5 + $0x28] sm:$0xff]  ;;  %vm2734_vm1 = vmmov 0   ;;  %vm359_vm2 = vcmask 64512   ;;  %s2735_s15 = smov 120  }
  0x28   :  { %2423 = vmatprep.subr.mxu0 %v70_v1  ;;  %2435 = vmatpush3.msra.mxu1 %v167_v0  ;;  %v68_v5 = vld [vmem:[#allocation5 + $0x8] sm:$0xff]  ;;  %v164_v6 = vld [vmem:[#allocation5 + $0x20] sm:$0xff]  ;;  %v65_v10 = vld [vmem:[#allocation2] sm:$0xff]  ;;  %s2737_s18 = smov 104  }
  0x29   :  { %2424 = vmatpush3.msra.mxu0 %v70_v1  ;;  %2436 = vmatprep.subr.mxu1 %v166_v2  ;;  %v161_v7 = vld [vmem:[#allocation2 + $0x10] sm:$0xff]  ;;  %v162_v9 = vld [vmem:[#allocation2 + $0x18] sm:$0xff]  ;;  %v66_v11 = vld [vmem:[#allocation2 + $0x8] sm:$0xff] }
  0x2a   :  { %2425 = vmatprep.subr.mxu0 %v69_v3  ;;  %2437 = vmatpush3.msra.mxu1 %v166_v2  ;;  %v67_v8 = vld [vmem:[#allocation5] sm:$0xff]  ;;  %v264_v13 = vld [vmem:[#allocation5 + $0x58] sm:$0xff]  ;;  %v263_v14 = vld [vmem:[#allocation5 + $0x50] sm:$0xff] }
  0x2b   :  { %2426 = vmatpush3.msra.mxu0 %v69_v3  ;;  %2438 = vmatprep.subr.mxu1 %v165_v4  ;;  %v258_v15 = vld [vmem:[#allocation2 + $0x20] sm:$0xff]  ;;  %v262_v16 = vld [vmem:[#allocation5 + $0x48] sm:$0xff]  ;;  %v261_v17 = vld [vmem:[#allocation5 + $0x40] sm:$0xff] }
  0x2c   :  { %2427 = vmatprep.subr.mxu0 %v68_v5  ;;  %2439 = vmatpush3.msra.mxu1 %v165_v4  ;;  %v259_v18 = vld [vmem:[#allocation2 + $0x28] sm:$0xff]  ;;  %v2317_v19 = vld [vmem:[%s3029_s2 + $0x1] ss:$0 sm:$0xff]  ;;  %v2313_v21 = vld [vmem:[%s3029_s2] ss:$0 sm:$0xff] }
  0x2d   :  { %2428 = vmatpush3.msra.mxu0 %v68_v5  ;;  %2440 = vmatprep.subr.mxu1 %v164_v6  ;;  %v2321_v29 = vld [vmem:[%s3029_s2 + $0x2] ss:$0 sm:$0xff]  ;;  %s2736_s2 = smov 112   ;;  %v2860_v55 = vld [vmem:[#allocation7 + $0x8] sm:$0xff]  ;;  %v2865_v60 = vld [vmem:[#allocation7] sm:$0xff] }
  0x2e   :  { %2442 = vmatprep.mubr.msk.f32.mxu1 %vm78_vm0, %v161_v7  ;;  %2441 = vmatpush3.msra.mxu1 %v164_v6 }
  0x2f   :  { %2429 = vmatprep.subr.mxu0 %v67_v8  ;;  %2443 = vmatmul.mubr.msk.f32.vlgmr.msra.gmra.mxu1 %vm78_vm0, %v162_v9 }
  0x30   :  { %2430 = vmatpush3.msra.mxu0 %v67_v8  ;;  %2431 = vmatprep.mubr.msk.f32.mxu0 %vm78_vm0, %v65_v10 }
  0x31   :  { %2432 = vmatmul.mubr.msk.f32.vlgmr.msra.gmra.mxu0 %vm78_vm0, %v66_v11  ;;  %2456 = vmatprep.subr.mxu1 %v2733_v12 }
  0x32   :  { %2458 = vmatprep.mubr.msk.f32.mxu1 %vm2734_vm1, %v2733_v12  ;;  %2445 = vmatprep.subr.mxu0 %v264_v13 }
  0x33   :  { %2446 = vmatpush3.msra.mxu0 %v264_v13  ;;  %2453 = vmatprep.mubr.msk.f32.mxu0 %vm78_vm0, %v258_v15 }
  0x34   :  { %2447 = vmatprep.subr.mxu0 %v263_v14 }
  0x35   :  { %2448 = vmatpush3.msra.mxu0 %v263_v14 }
  0x36   :  { %2449 = vmatprep.subr.mxu0 %v262_v16 }
  0x37   :  { %2450 = vmatpush3.msra.mxu0 %v262_v16 }
  0x38   :  { %2451 = vmatprep.subr.mxu0 %v261_v17 }
  0x39   :  { %2452 = vmatpush3.msra.mxu0 %v261_v17  ;;  %v2895_v17 = vld [vmem:[#allocation7 + $0x10] sm:$0xff] }
  0x3a   :  { %2454 = vmatmul.mubr.msk.f32.vlgmr.msra.gmra.mxu0 %vm78_vm0, %v259_v18  ;;  %2466 = vmatprep.subr.mxu0 %v2733_v12 }
  0x3b   :  { %2468 = vmatprep.mubr.msk.f32.mxu0 %vm2734_vm1, %v2733_v12 }
  0xef   :  { %v2444_v20 = vpop.f32.mrf.mxu1 }
  0xf0   :  { %v2811_v22 = vadd.f32 %v2444_v20, %v2317_v19 }
  0xf1   :  { %v2433_v23 = vpop.f32.mrf.mxu0  ;;  %v248_v24 = vpop.f32.mrf.mxu1 }
  0xf2   :  { %v2813_v25 = vadd.f32 %v2433_v23, %v2313_v21  ;;  %v2815_v26 = vadd.f32 %v2317_v19, %v248_v24 }
  0xf3   :  { %v151_v27 = vpop.f32.mrf.mxu0 }
  0xf4   :  { %v2817_v28 = vadd.f32 %v2313_v21, %v151_v27  ;;  %522 = vrot.lane.b32.xlu0 %v2815_v26, %s2735_s15  ;;  %2457 = vmatpush3.xpose.msk.msra.mxu1 %vm359_vm2, %v2815_v26 }
  0xf5   :  { %2461 = vmatprep.subr.mxu1 %v2733_v12 }
  0xf7   :  { %2459 = vmatmul.mubr.msk.f32.vlgmr.msra.gmra.mxu1 %vm359_vm2, %v2817_v28 }
  0xf8   :  { %520 = vrot.lane.b32.xlu0 %v2817_v28, %s2735_s15  ;;  %2463 = vmatprep.mubr.msk.f32.mxu1 %vm2734_vm1, %v2733_v12 }
  0xfa   :  { %v2455_v30 = vpop.f32.mrf.mxu0 }
  0xfb   :  { %v2833_v31 = vadd.f32 %v2455_v30, %v2321_v29 }
  0xfc   :  { %v345_v32 = vpop.f32.mrf.mxu0 }
  0xfd   :  { %v2835_v33 = vadd.f32 %v2321_v29, %v345_v32 }
  0xff   :  { %2462 = vmatpush3.msra.mxu1 %v2835_v33 }
 0x100   :  { %2471 = vmatprep.subr.mxu1 %v2733_v12 }
 0x166   :  { %v523_v34 = vpop.permute.xlu0 %522 }
 0x167   :  { %2467 = vmatpush3.xpose.msk.msra.mxu0 %vm359_vm2, %v523_v34 }
 0x168   :  { %2476 = vmatprep.subr.mxu0 %v2733_v12 }
 0x16a   :  { %v521_v35 = vpop.permute.xlu0 %520 }
 0x16b   :  { %2469 = vmatmul.mubr.msk.f32.vlgmr.msra.gmra.mxu0 %vm359_vm2, %v521_v35 }
 0x16c   :  { %2478 = vmatprep.mubr.msk.f32.mxu0 %vm2734_vm1, %v2733_v12  ;;  %2477 = vmatpush3.msra.mxu0 %v2860_v55 }
 0x16d   :  { %2486 = vmatprep.subr.mxu0 %v2733_v12 }
 0x1b7   :  { %v432_v36 = vpop.f32.mrf.mxu1 }
 0x1b8   :  { %v436_v37 = vsel %vm359_vm2, %v432_v36, -inf }
 0x1b9   :  { %437 = vmax.xlane.f32.xlu1 %v436_v37  ;;  %v2460_v38 = vpop.f32.mrf.mxu1 }
 0x22b   :  { %v594_v39 = vpop.f32.mrf.mxu0 }
 0x22c   :  { %v598_v40 = vsel %vm359_vm2, %v594_v39, -inf }
 0x22d   :  { %v2470_v41 = vpop.f32.mrf.mxu0  ;;  %599 = vmax.xlane.f32.xlu1 %v598_v40 }
 0x22e   :  { %v2916_v41 = vld [vmem:[#allocation7 + $0x18] sm:$0xff] }
 0x242   :  { %v438_v42 = vpop.xlane.xlu1 %437 }
 0x243   :  { %v439_v43 = vsub.f32 %v432_v36, %v438_v42 }
 0x245   :  { %v440_v44 = vmul.f32 1.442695, %v439_v43 }
 0x247   :  { %2588 = vpow2.f32 %v440_v44 }
 0x254   :  { %v2589_v45 = vpop.eup %2588 }
 0x255   :  { %v442_v46 = vsel %vm359_vm2, %v2589_v45, 0.0 }
 0x256   :  { %443 = vadd.xlane.f32.xlu0 %v442_v46 }
 0x26c   :  { %921 = vrot.lane.b32.xlu0 %v2835_v33, %s2736_s2 }
 0x2b6   :  { %v600_v47 = vpop.xlane.xlu1 %599 }
 0x2b7   :  { %v601_v48 = vsub.f32 %v594_v39, %v600_v47 }
 0x2b9   :  { %v602_v49 = vmul.f32 1.442695, %v601_v48 }
 0x2bb   :  { %2590 = vpow2.f32 %v602_v49 }
 0x2c8   :  { %v2591_v50 = vpop.eup %2590 }
 0x2c9   :  { %v604_v51 = vsel %vm359_vm2, %v2591_v50, 0.0 }
 0x2ca   :  { %605 = vadd.xlane.f32.xlu1 %v604_v51 }
 0x2db   :  { %610 = vrot.lane.b32.xlu1 %v2835_v33, %s2735_s15 }
 0x2df   :  { %v444_v52 = vpop.xlane.xlu0 %443  ;;  %834 = vrot.lane.b32.xlu1 %v2815_v26, %s2736_s2 }
 0x2e0   :  { %2592 = vrcp.f32 %v444_v52 }
 0x2e3   :  { %832 = vrot.lane.b32.xlu1 %v2817_v28, %s2736_s2  ;;  %v922_v62 = vpop.permute.xlu0 %921 }
 0x2ed   :  { %v2593_v53 = vpop.eup %2592 }
 0x2ee   :  { %v446_v54 = vmul.f32 %v2593_v53, %v2589_v45 }
 0x2f0   :  { %2464 = vmatmul.mubr.msk.f32.vlgmr.msra.gmra.mxu1 %vm359_vm2, %v446_v54  ;;  %1317 = vst.msk [vmem:[#allocation9] sm:$0xff] %vm359_vm2, %v446_v54 }
 0x2f1   :  { %2473 = vmatprep.mubr.msk.f32.mxu1 %vm2734_vm1, %v2733_v12 }
 0x353   :  { %v606_v56 = vpop.xlane.xlu1 %605 }
 0x354   :  { %2594 = vrcp.f32 %v606_v56 }
 0x357   :  { %v611_v57 = vpop.permute.xlu1 %610 }
 0x358   :  { %2472 = vmatpush3.msra.mxu1 %v611_v57 }
 0x359   :  { %2481 = vmatprep.subr.mxu1 %v2733_v12 }
 0x35b   :  { %v835_v0 = vpop.permute.xlu1 %834 }
 0x35f   :  { %v833_v3 = vpop.permute.xlu1 %832 }
 0x361   :  { %v2595_v58 = vpop.eup %2594 }
 0x362   :  { %v608_v59 = vmul.f32 %v2595_v58, %v2591_v50 }
 0x364   :  { %2474 = vmatmul.mubr.msk.f32.vlgmr.msra.gmra.mxu1 %vm359_vm2, %v608_v59  ;;  %1318 = vst.msk [vmem:[#allocation9 + $0x8] sm:$0xff] %vm359_vm2, %v608_v59 }
 0x365   :  { %2482 = vmatpush3.msra.mxu1 %v2865_v60  ;;  %2483 = vmatprep.mubr.msk.f32.mxu1 %vm2734_vm1, %v2733_v12 }
 0x366   :  { %2491 = vmatprep.subr.mxu1 %v2733_v12 }
 0x3b0   :  { %v516_v61 = vpop.f32.mrf.mxu1 }
 0x3b1   :  { %2484 = vmatmul.mubr.msk.f32.vlgmr.msra.gmra.mxu1 %vm359_vm2, %v516_v61 }
 0x3b2   :  { %2492 = vmatpush3.msra.mxu1 %v922_v62  ;;  %v2465_v63 = vpop.f32.mrf.mxu1  ;;  %2493 = vmatprep.mubr.msk.f32.mxu1 %vm2734_vm1, %v2733_v12 }
 0x3b3   :  { %2501 = vmatprep.subr.mxu1 %v2733_v12 }
 0x424   :  { %v682_v1 = vpop.f32.mrf.mxu1 }
 0x425   :  { %2479 = vmatmul.mubr.msk.f32.vlgmr.msra.gmra.mxu0 %vm359_vm2, %v682_v1 }
 0x426   :  { %2487 = vmatpush3.xpose.msk.msra.mxu0 %vm359_vm2, %v835_v0  ;;  %v2475_v2 = vpop.f32.mrf.mxu1  ;;  %2488 = vmatprep.mubr.msk.f32.mxu0 %vm2734_vm1, %v2733_v12 }
 0x427   :  { %2496 = vmatprep.subr.mxu0 %v2733_v12  ;;  %v2956_v2 = vld [vmem:[%s3031_s4] ss:$0 sm:$0xff]  ;;  %s2738_s4 = smov [#allocation9]  }
 0x428   :  { %s2296_s21 = sshll.u32 %s2738_s4, 4  ;;  %s2297_s21 = int_to_ptr.vmem [resolvable:$true] %s2296_s21 }
 0x429   :  { %2489 = vmatmul.mubr.msk.f32.vlgmr.msra.gmra.mxu0 %vm359_vm2, %v833_v3  ;;  %s2680_s22 = scalar_lea.vmem %s2297_s21, 1024  ;;  %p2685_p2 = scmp.lt.s32.totalorder %s2297_s21, %s2297_s21 }
 0x42a   :  { %2498 = vmatprep.mubr.msk.f32.mxu0 %vm2734_vm1, %v2733_v12  ;;  %2497 = vmatpush3.msra.mxu0 %v2895_v17  ;;  %p2681_p1 = scmp.ne.s32.totalorder %s2297_s21, %s2680_s22  ;;  %p2686_p3 = scmp.lt.s32.totalorder %s2680_s22, %s2680_s22 }
 0x42b   :  { %2506 = vmatprep.subr.mxu0 %v2733_v12 }
 0x42c   :  { %p2687_p4 = por %p2686_p3, %p2685_p2 }
 0x42e   :  { %p2688_p5 = pnand %p2687_p4, %p2681_p1 }
 0x471   :  { %v828_v4 = vpop.f32.mrf.mxu1 }
 0x473   :  { %v2485_v5 = vpop.f32.mrf.mxu1 }
 0x4e5   :  { %v755_v6 = vpop.f32.mrf.mxu0 }
 0x4e6   :  { %v829_v37 = vadd.f32 %v828_v4, %v755_v6 }
 0x4e7   :  { %v2480_v7 = vpop.f32.mrf.mxu0 }
 0x4e9   :  { %v906_v8 = vpop.f32.mrf.mxu0 }
 0x4ea   :  { %v910_v9 = vsel %vm359_vm2, %v906_v8, -inf }
 0x4eb   :  { %911 = vmax.xlane.f32.xlu1 %v910_v9  ;;  %v2490_v10 = vpop.f32.mrf.mxu0 }
 0x4fc   :  { %1160 = vrot.lane.b32.xlu1 %v2835_v33, %s2737_s18 }
 0x500   :  { %1483 = vrot.lane.b32.xlu1 %v2811_v22, %s2735_s15 }
 0x574   :  { %v912_v11 = vpop.xlane.xlu1 %911 }
 0x575   :  { %v913_v13 = vsub.f32 %v906_v8, %v912_v11 }
 0x577   :  { %v914_v14 = vmul.f32 1.442695, %v913_v13 }
 0x579   :  { %2596 = vpow2.f32 %v914_v14 }
 0x586   :  { %v2597_v15 = vpop.eup %2596 }
 0x587   :  { %v916_v16 = vsel %vm359_vm2, %v2597_v15, 0.0 }
 0x588   :  { %917 = vadd.xlane.f32.xlu0 %v916_v16 }
 0x59e   :  { %1073 = vrot.lane.b32.xlu0 %v2815_v26, %s2737_s18  ;;  %v1161_v26 = vpop.permute.xlu1 %1160 }
 0x5a2   :  { %1071 = vrot.lane.b32.xlu0 %v2817_v28, %s2737_s18  ;;  %v1484_v42 = vpop.permute.xlu1 %1483 }
 0x611   :  { %v918_v18 = vpop.xlane.xlu0 %917 }
 0x612   :  { %2598 = vrcp.f32 %v918_v18 }
 0x615   :  { %v1074_v20 = vpop.permute.xlu0 %1073 }
 0x619   :  { %v1072_v23 = vpop.permute.xlu0 %1071 }
 0x61f   :  { %v2599_v19 = vpop.eup %2598 }
 0x620   :  { %v920_v21 = vmul.f32 %v2599_v19, %v2597_v15 }
 0x622   :  { %2494 = vmatmul.mubr.msk.f32.vlgmr.msra.gmra.mxu1 %vm359_vm2, %v920_v21  ;;  %1319 = vst.msk [vmem:[#allocation9 + $0x10] sm:$0xff] %vm359_vm2, %v920_v21 }
 0x623   :  { %2502 = vmatpush3.xpose.msk.msra.mxu1 %vm359_vm2, %v1074_v20  ;;  %2503 = vmatprep.mubr.msk.f32.mxu1 %vm2734_vm1, %v2733_v12 }
 0x624   :  { %2511 = vmatprep.subr.mxu1 %v2733_v12 }
 0x626   :  { %2504 = vmatmul.mubr.msk.f32.vlgmr.msra.gmra.mxu1 %vm359_vm2, %v1072_v23 }
 0x627   :  { %2513 = vmatprep.mubr.msk.f32.mxu1 %vm2734_vm1, %v2733_v12  ;;  %2512 = vmatpush3.msra.mxu1 %v2916_v41 }
 0x628   :  { %2521 = vmatprep.subr.mxu1 %v2733_v12 }
 0x6e2   :  { %v993_v24 = vpop.f32.mrf.mxu1 }
 0x6e3   :  { %2499 = vmatmul.mubr.msk.f32.vlgmr.msra.gmra.mxu0 %vm359_vm2, %v993_v24 }
 0x6e4   :  { %2507 = vmatpush3.msra.mxu0 %v1161_v26  ;;  %v2495_v27 = vpop.f32.mrf.mxu1  ;;  %2508 = vmatprep.mubr.msk.f32.mxu0 %vm2734_vm1, %v2733_v12 }
 0x6e5   :  { %2516 = vmatprep.subr.mxu0 %v2733_v12 }
 0x6e6   :  { %v1145_v28 = vpop.f32.mrf.mxu1 }
 0x6e7   :  { %v1149_v29 = vsel %vm359_vm2, %v1145_v28, -inf }
 0x6e8   :  { %1150 = vmax.xlane.f32.xlu0 %v1149_v29  ;;  %v2505_v30 = vpop.f32.mrf.mxu1 }
 0x771   :  { %v1151_v32 = vpop.xlane.xlu0 %1150 }
 0x772   :  { %v1152_v33 = vsub.f32 %v1145_v28, %v1151_v32 }
 0x774   :  { %v1153_v34 = vmul.f32 1.442695, %v1152_v33 }
 0x776   :  { %2600 = vpow2.f32 %v1153_v34 }
 0x783   :  { %v2601_v35 = vpop.eup %2600 }
 0x784   :  { %v1155_v36 = vsel %vm359_vm2, %v2601_v35, 0.0 }
 0x785   :  { %1156 = vadd.xlane.f32.xlu1 %v1155_v36 }
 0x796   :  { %1481 = vrot.lane.b32.xlu1 %v2813_v25, %s2735_s15 }
 0x7a3   :  { %v1066_v38 = vpop.f32.mrf.mxu0 }
 0x7a4   :  { %v1070_v39 = vadd.f32 %v1066_v38, %v829_v37 }
 0x7a5   :  { %v2500_v40 = vpop.f32.mrf.mxu0 }
 0x80e   :  { %v1157_v43 = vpop.xlane.xlu1 %1156 }
 0x80f   :  { %2602 = vrcp.f32 %v1157_v43 }
 0x812   :  { %v1482_v46 = vpop.permute.xlu1 %1481 }
 0x81c   :  { %v2603_v44 = vpop.eup %2602 }
 0x81d   :  { %v1159_v45 = vmul.f32 %v2603_v44, %v2601_v35 }
 0x81f   :  { %2509 = vmatmul.mubr.msk.f32.vlgmr.msra.gmra.mxu0 %vm359_vm2, %v1159_v45  ;;  %1320 = vst.msk [vmem:[#allocation9 + $0x18] sm:$0xff] %vm359_vm2, %v1159_v45 }
 0x820   :  { %2517 = vmatpush3.xpose.msk.msra.mxu0 %vm359_vm2, %v2811_v22  ;;  %2518 = vmatprep.mubr.msk.f32.mxu0 %vm2734_vm1, %v2733_v12 }
 0x821   :  { %2526 = vmatprep.subr.mxu0 %v2733_v12 }
 0x823   :  { %2519 = vmatmul.mubr.msk.f32.vlgmr.msra.gmra.mxu0 %vm359_vm2, %v2813_v25 }
 0x824   :  { %2527 = vmatpush3.xpose.msk.msra.mxu0 %vm359_vm2, %v1484_v42  ;;  %2528 = vmatprep.mubr.msk.f32.mxu0 %vm2734_vm1, %v2733_v12 }
 0x825   :  { %2536 = vmatprep.subr.mxu0 %v2733_v12 }
 0x827   :  { %2529 = vmatmul.mubr.msk.f32.vlgmr.msra.gmra.mxu0 %vm359_vm2, %v1482_v46 }
 0x828   :  { %2537 = vmatpush3.msra.mxu0 %v2860_v55  ;;  %2538 = vmatprep.mubr.msk.f32.mxu0 %vm2734_vm1, %v2733_v12 }
 0x829   :  { %2546 = vmatprep.subr.mxu0 %v2733_v12 }
 0x8df   :  { %v1232_v47 = vpop.f32.mrf.mxu0 }
 0x8e0   :  { %2514 = vmatmul.mubr.msk.f32.vlgmr.msra.gmra.mxu1 %vm359_vm2, %v1232_v47 }
 0x8e1   :  { %2522 = vmatpush3.msra.mxu1 %v2833_v31  ;;  %v2510_v48 = vpop.f32.mrf.mxu0  ;;  %2523 = vmatprep.mubr.msk.f32.mxu1 %vm2734_vm1, %v2733_v12 }
 0x8e2   :  { %2531 = vmatprep.subr.mxu1 %v2733_v12 }
 0x8e3   :  { %v1393_v49 = vpop.f32.mrf.mxu0 }
 0x8e4   :  { %v1397_v50 = vsel %vm359_vm2, %v1393_v49, -inf }
 0x8e5   :  { %1398 = vmax.xlane.f32.xlu1 %v1397_v50  ;;  %v2520_v51 = vpop.f32.mrf.mxu0 }
 0x8e7   :  { %v1555_v52 = vpop.f32.mrf.mxu0 }
 0x8e8   :  { %v1559_v53 = vsel %vm359_vm2, %v1555_v52, -inf }
 0x8e9   :  { %1560 = vmax.xlane.f32.xlu0 %v1559_v53  ;;  %v2530_v54 = vpop.f32.mrf.mxu0 }
 0x8f6   :  { %1793 = vrot.lane.b32.xlu1 %v2813_v25, %s2736_s2 }
 0x96e   :  { %v1399_v55 = vpop.xlane.xlu1 %1398 }
 0x96f   :  { %v1400_v56 = vsub.f32 %v1393_v49, %v1399_v55 }
 0x971   :  { %v1401_v57 = vmul.f32 1.442695, %v1400_v56 }
 0x972   :  { %v1561_v58 = vpop.xlane.xlu0 %1560 }
 0x973   :  { %2604 = vpow2.f32 %v1401_v57  ;;  %v1562_v59 = vsub.f32 %v1555_v52, %v1561_v58 }
 0x975   :  { %v1563_v61 = vmul.f32 1.442695, %v1562_v59 }
 0x977   :  { %2606 = vpow2.f32 %v1563_v61 }
 0x980   :  { %v2605_v62 = vpop.eup %2604 }
 0x981   :  { %v1403_v63 = vsel %vm359_vm2, %v2605_v62, 0.0 }
 0x982   :  { %1404 = vadd.xlane.f32.xlu0 %v1403_v63 }
 0x984   :  { %v2607_v0 = vpop.eup %2606 }
 0x985   :  { %v1565_v1 = vsel %vm359_vm2, %v2607_v0, 0.0 }
 0x986   :  { %1566 = vadd.xlane.f32.xlu0 %v1565_v1 }
 0x99c   :  { %1571 = vrot.lane.b32.xlu0 %v2833_v31, %s2735_s15 }
 0x9a0   :  { %1795 = vrot.lane.b32.xlu0 %v2811_v22, %s2736_s2  ;;  %v1305_v3 = vpop.f32.mrf.mxu1 }
 0x9a1   :  { %v1309_v4 = vadd.f32 %v1305_v3, %v1070_v39 }
 0x9a2   :  { %v2515_v5 = vpop.f32.mrf.mxu1 }
 0x9a3   :  { %v1316_v6 = vadd.f32 %v2956_v2, %v1309_v4 }
 0x9a5   :  { %2277 = vst.msk [vmem:[#allocation8] sm:$0xff] %vm78_vm0, %v1316_v6 }
 0xa0b   :  { %v1405_v7 = vpop.xlane.xlu0 %1404 }
 0xa0c   :  { %2608 = vrcp.f32 %v1405_v7 }
 0xa0f   :  { %v1567_v8 = vpop.xlane.xlu0 %1566 }
 0xa10   :  { %2610 = vrcp.f32 %v1567_v8 }
 0xa13   :  { %v1572_v11 = vpop.permute.xlu0 %1571 }
 0xa17   :  { %v1796_v19 = vpop.permute.xlu0 %1795 }
 0xa19   :  { %v2609_v9 = vpop.eup %2608 }
 0xa1a   :  { %v1407_v10 = vmul.f32 %v2609_v9, %v2605_v62 }
 0xa1c   :  { %2524 = vmatmul.mubr.msk.f32.vlgmr.msra.gmra.mxu1 %vm359_vm2, %v1407_v10  ;;  %2273 = vst.msk [vmem:[#allocation9 + $0x20] sm:$0xff] %vm359_vm2, %v1407_v10 }
 0xa1d   :  { %v2611_v13 = vpop.eup %2610  ;;  %2532 = vmatpush3.msra.mxu1 %v1572_v11  ;;  %2533 = vmatprep.mubr.msk.f32.mxu1 %vm2734_vm1, %v2733_v12 }
 0xa1e   :  { %v1569_v14 = vmul.f32 %v2611_v13, %v2607_v0  ;;  %2541 = vmatprep.subr.mxu1 %v2733_v12 }
 0xa20   :  { %2534 = vmatmul.mubr.msk.f32.vlgmr.msra.gmra.mxu1 %vm359_vm2, %v1569_v14  ;;  %2274 = vst.msk [vmem:[#allocation9 + $0x28] sm:$0xff] %vm359_vm2, %v1569_v14 }
 0xa21   :  { %2542 = vmatpush3.msra.mxu1 %v2865_v60  ;;  %2543 = vmatprep.mubr.msk.f32.mxu1 %vm2734_vm1, %v2733_v12  ;;  %v1794_v60 = vpop.permute.xlu1 %1793 }
 0xa22   :  { %2551 = vmatprep.subr.mxu1 %v2733_v12 }
 0xadc   :  { %v1477_v15 = vpop.f32.mrf.mxu1 }
 0xadd   :  { %2544 = vmatmul.mubr.msk.f32.vlgmr.msra.gmra.mxu1 %vm359_vm2, %v1477_v15 }
 0xade   :  { %v2525_v16 = vpop.f32.mrf.mxu1  ;;  %2553 = vmatprep.mubr.msk.f32.mxu1 %vm2734_vm1, %v2733_v12 }
 0xae0   :  { %v1643_v18 = vpop.f32.mrf.mxu1 }
 0xae1   :  { %2539 = vmatmul.mubr.msk.f32.vlgmr.msra.gmra.mxu0 %vm359_vm2, %v1643_v18 }
 0xae2   :  { %2547 = vmatpush3.xpose.msk.msra.mxu0 %vm359_vm2, %v1796_v19  ;;  %v2535_v20 = vpop.f32.mrf.mxu1  ;;  %2548 = vmatprep.mubr.msk.f32.mxu0 %vm2734_vm1, %v2733_v12 }
 0xae3   :  { %2556 = vmatprep.subr.mxu0 %v2733_v12 }
 0xae5   :  { %2549 = vmatmul.mubr.msk.f32.vlgmr.msra.gmra.mxu0 %vm359_vm2, %v1794_v60 }
 0xae6   :  { %2557 = vmatpush3.msra.mxu0 %v2895_v17  ;;  %2558 = vmatprep.mubr.msk.f32.mxu0 %vm2734_vm1, %v2733_v12 }
 0xae7   :  { %2566 = vmatprep.subr.mxu0 %v2733_v12 }
 0xb9d   :  { %v1789_v21 = vpop.f32.mrf.mxu1 }
 0xb9f   :  { %v2545_v23 = vpop.f32.mrf.mxu1 }
 0xba1   :  { %v1716_v24 = vpop.f32.mrf.mxu0 }
 0xba2   :  { %v1790_v26 = vadd.f32 %v1789_v21, %v1716_v24 }
 0xba3   :  { %v2540_v27 = vpop.f32.mrf.mxu0 }
 0xba5   :  { %v1867_v28 = vpop.f32.mrf.mxu0 }
 0xba6   :  { %v1871_v29 = vsel %vm359_vm2, %v1867_v28, -inf }
 0xba7   :  { %1872 = vmax.xlane.f32.xlu0 %v1871_v29  ;;  %v2550_v30 = vpop.f32.mrf.mxu0 }
 0xbbd   :  { %1882 = vrot.lane.b32.xlu0 %v2833_v31, %s2736_s2 }
 0xbc1   :  { %2032 = vrot.lane.b32.xlu0 %v2813_v25, %s2737_s18 }
 0xc30   :  { %v1873_v17 = vpop.xlane.xlu0 %1872 }
 0xc31   :  { %v1874_v32 = vsub.f32 %v1867_v28, %v1873_v17 }
 0xc33   :  { %v1875_v33 = vmul.f32 1.442695, %v1874_v32 }
 0xc34   :  { %v1883_v34 = vpop.permute.xlu0 %1882 }
 0xc35   :  { %2612 = vpow2.f32 %v1875_v33  ;;  %2552 = vmatpush3.msra.mxu1 %v1883_v34 }
 0xc36   :  { %2561 = vmatprep.subr.mxu1 %v2733_v12 }
 0xc38   :  { %v2033_v40 = vpop.permute.xlu0 %2032 }
 0xc42   :  { %v2613_v35 = vpop.eup %2612 }
 0xc43   :  { %v1877_v36 = vsel %vm359_vm2, %v2613_v35, 0.0 }
 0xc44   :  { %1878 = vadd.xlane.f32.xlu1 %v1877_v36 }
 0xc55   :  { %2034 = vrot.lane.b32.xlu1 %v2811_v22, %s2737_s18 }
 0xccd   :  { %v1879_v37 = vpop.xlane.xlu1 %1878 }
 0xcce   :  { %2614 = vrcp.f32 %v1879_v37 }
 0xcd1   :  { %v2035_v25 = vpop.permute.xlu1 %2034 }
 0xcdb   :  { %v2615_v38 = vpop.eup %2614 }
 0xcdc   :  { %v1881_v39 = vmul.f32 %v2615_v38, %v2613_v35 }
 0xcde   :  { %2554 = vmatmul.mubr.msk.f32.vlgmr.msra.gmra.mxu1 %vm359_vm2, %v1881_v39  ;;  %2275 = vst.msk [vmem:[#allocation9 + $0x30] sm:$0xff] %vm359_vm2, %v1881_v39 }
 0xcdf   :  { %2562 = vmatpush3.xpose.msk.msra.mxu1 %vm359_vm2, %v2035_v25  ;;  %2563 = vmatprep.mubr.msk.f32.mxu1 %vm2734_vm1, %v2733_v12 }
 0xce0   :  { %2571 = vmatprep.subr.mxu1 %v2733_v12 }
 0xce2   :  { %2564 = vmatmul.mubr.msk.f32.vlgmr.msra.gmra.mxu1 %vm359_vm2, %v2033_v40 }
 0xce3   :  { %2572 = vmatpush3.msra.mxu1 %v2916_v41  ;;  %2573 = vmatprep.mubr.msk.f32.mxu1 %vm2734_vm1, %v2733_v12 }
 0xd9e   :  { %v1954_v22 = vpop.f32.mrf.mxu1 }
 0xd9f   :  { %2559 = vmatmul.mubr.msk.f32.vlgmr.msra.gmra.mxu0 %vm359_vm2, %v1954_v22 }
 0xda0   :  { %v2555_v42 = vpop.f32.mrf.mxu1  ;;  %2568 = vmatprep.mubr.msk.f32.mxu0 %vm2734_vm1, %v2733_v12 }
 0xda2   :  { %v2106_v43 = vpop.f32.mrf.mxu1 }
 0xda3   :  { %v2110_v44 = vsel %vm359_vm2, %v2106_v43, -inf }
 0xda4   :  { %2111 = vmax.xlane.f32.xlu0 %v2110_v44  ;;  %v2565_v45 = vpop.f32.mrf.mxu1 }
 0xdba   :  { %2121 = vrot.lane.b32.xlu0 %v2833_v31, %s2737_s18 }
 0xe2d   :  { %v2112_v46 = vpop.xlane.xlu0 %2111 }
 0xe2e   :  { %v2113_v41 = vsub.f32 %v2106_v43, %v2112_v46 }
 0xe30   :  { %v2114_v47 = vmul.f32 1.442695, %v2113_v41 }
 0xe31   :  { %v2122_v48 = vpop.permute.xlu0 %2121 }
 0xe32   :  { %2616 = vpow2.f32 %v2114_v47  ;;  %2567 = vmatpush3.msra.mxu0 %v2122_v48 }
 0xe3f   :  { %v2617_v49 = vpop.eup %2616 }
 0xe40   :  { %v2116_v50 = vsel %vm359_vm2, %v2617_v49, 0.0 }
 0xe41   :  { %2117 = vadd.xlane.f32.xlu1 %v2116_v50 }
 0xe5f   :  { %v2027_v51 = vpop.f32.mrf.mxu0 }
 0xe60   :  { %v2031_v12 = vadd.f32 %v2027_v51, %v1790_v26 }
 0xe61   :  { %v2560_v52 = vpop.f32.mrf.mxu0 }
 0xeca   :  { %v2118_v53 = vpop.xlane.xlu1 %2117 }
 0xecb   :  { %2618 = vrcp.f32 %v2118_v53 }
 0xed8   :  { %v2619_v54 = vpop.eup %2618 }
 0xed9   :  { %v2120_v55 = vmul.f32 %v2619_v54, %v2617_v49 }
 0xedb   :  { %2569 = vmatmul.mubr.msk.f32.vlgmr.msra.gmra.mxu0 %vm359_vm2, %v2120_v55  ;;  %2276 = vst.msk [vmem:[#allocation9 + $0x38] sm:$0xff] %vm359_vm2, %v2120_v55 }
 0xf9b   :  { %v2193_v31 = vpop.f32.mrf.mxu0 }
 0xf9c   :  { %2574 = vmatmul.mubr.msk.f32.vlgmr.msra.gmra.mxu1 %vm359_vm2, %v2193_v31 }
 0xf9d   :  { %v2570_v56 = vpop.f32.mrf.mxu0 }
 0xf9e   :  { %2691 = shalt.err (!%p2688_p5)
}
 0xf9f   :  { %2302 = dma.vmem_to_hbm [thread:$0]  %s2297_s21, 1024, %s3033_s6, [#allocation10], %s2730_s26, %s2730_s26, %s2731_s27  }
 0xfa0   :  { %s2739_s25 = smov [#allocation8]  }
 0xfa1   :  { %s2284_s28 = sshll.u32 %s2739_s25, 4  ;;  %s2285_s28 = int_to_ptr.vmem [resolvable:$true] %s2284_s28 }
 0xfa2   :  { %s2700_s29 = scalar_lea.vmem %s2285_s28, 256  ;;  %p2705_p7 = scmp.lt.s32.totalorder %s2285_s28, %s2285_s28 }
 0xfa3   :  { %p2701_p6 = scmp.ne.s32.totalorder %s2285_s28, %s2700_s29  ;;  %p2706_p8 = scmp.lt.s32.totalorder %s2700_s29, %s2700_s29 }
 0xfa5   :  { %p2707_p9 = por %p2706_p8, %p2705_p7 }
 0xfa7   :  { %p2708_p10 = pnand %p2707_p9, %p2701_p6 }
0x105c   :  { %v2266_v57 = vpop.f32.mrf.mxu1 }
0x105d   :  { %v2270_v58 = vadd.f32 %v2266_v57, %v2031_v12 }
0x105e   :  { %v2575_v59 = vpop.f32.mrf.mxu1 }
0x105f   :  { %v2271_v61 = vadd.f32 %v2956_v2, %v2270_v58 }
0x1061   :  { %2278 = vst.msk [vmem:[#allocation8 + $0x8] sm:$0xff] %vm78_vm0, %v2271_v61 }
0x1062   :  { %2711 = shalt.err (!%p2708_p10)
}
0x1063   :  { %2290 = dma.vmem_to_hbm [thread:$0]  %s2285_s28, 256, %s3032_s5, [#allocation4], %s2730_s26, %s2730_s26, %s2731_s27  }
0x1064   :  { %2724 = dma.done.wait [#allocation4], 256  }
0x1065   :  { %2725 = vsyncadd [#allocation4], 4294967040 }
0x1066   :  { %2726 = dma.done.wait [#allocation10], 1024  }
0x1067   :  { %2727 = vsyncadd [#allocation10], 4294966272 }
0x1068   :  { %2309 = vsyncpa [#allocation3], 1 }
0x1069   :  { %2310 = vsyncpa [#allocation6], 1 }
0x106a   :  { %2311 = vsyncpa [#allocation4], 1 }
0x106b   :  { %2312 = vsyncpa [#allocation10], 1 }

</bundles_post_ra>
